<compile_context>
chip_gen: v5e
topology: v5e:2x2
jax: 0.10.0
libtpu: 0.0.40
codegen_flags: <defaults>
</compile_context>

<pallas_src>
import functools

import jax
import jax.numpy as jnp
from jax.experimental import pallas as pl
from jax.experimental.pallas import tpu as pltpu


# ----------------------- in-kernel elementwise helpers -----------------------

def _erf(x):
    # Abramowitz & Stegun 7.1.26 rational approximation (|err| < ~1.5e-7).
    # The divide is an EUP approximate reciprocal + one Newton step, keeping
    # the GELU epilogue off the VALU critical path at ~f32 accuracy.
    a1, a2, a3, a4, a5 = 0.254829592, -0.284496736, 1.421413741, -1.453152027, 1.061405429
    p = 0.3275911
    s = jnp.where(x >= 0.0, 1.0, -1.0)
    ax = jnp.abs(x)
    d = 1.0 + p * ax
    r = pl.reciprocal(d, approx=True)
    t = r * (2.0 - d * r)                       # one Newton refinement of 1/d
    poly = ((((a5 * t + a4) * t + a3) * t + a2) * t + a1) * t
    return s * (1.0 - poly * jnp.exp(-ax * ax))


def _gelu(x):
    # erf-"exact" GELU, matching torch.nn.GELU() default (not the tanh approx).
    return 0.5 * x * (1.0 + _erf(x * 0.7071067811865475))


# --------------------------------- kernels -----------------------------------

def _mm_bias_gelu_kernel(x_ref, w_ref, b_ref, o_ref):
    """GELU(W @ x + b). x: (Cin, TP) pixels-on-lanes; o: (Cout, TP)."""
    y = jnp.dot(w_ref[...], x_ref[...], preferred_element_type=jnp.float32)
    y = y + b_ref[...]
    o_ref[...] = _gelu(y).astype(o_ref.dtype)


def _gn_mm_gelu_kernel(x_ref, gamma_ref, beta_ref, agg_ref, w_ref, b_ref,
                       o_ref, *, eps):
    """Per-sample GroupNorm -> 1x1 conv -> GELU. x block: (1, C, HW)."""
    x = x_ref[0]                                              # (C, HW) f32
    # agg is block-diagonal (C, C) with 1/(cg*HW) entries within each group:
    # (agg @ x) summed over HW gives the per-group mean broadcast to channels.
    m = jnp.dot(agg_ref[...], x, preferred_element_type=jnp.float32)
    mean_c = jnp.sum(m, axis=1, keepdims=True)                # (C, 1)
    xc = x - mean_c                                           # two-pass (safe)
    v = jnp.dot(agg_ref[...], xc * xc, preferred_element_type=jnp.float32)
    var_c = jnp.sum(v, axis=1, keepdims=True)                 # biased, like PyTorch
    inv_c = jax.lax.rsqrt(var_c + eps)
    xn = xc * (inv_c * gamma_ref[...]) + beta_ref[...]
    y = jnp.dot(w_ref[...], xn, preferred_element_type=jnp.float32) + b_ref[...]
    o_ref[0] = _gelu(y).astype(o_ref.dtype)


def _grouped_dw_conv_gelu_kernel(x_ref, w_ref, b_ref, o_ref):
    """Grouped conv (groups == Cout, 2 in-channels/group) + bias + GELU.

    x: (1, S, C, P) pre-gathered tap slabs (S = 2 * k * k, P = Ho*Wo),
    w: (S, C, 1), b: (C, 1), o: (1, C, P).  One whole-tile FMA per slab,
    single store per grid step.
    """
    C, P = o_ref.shape[1], o_ref.shape[2]
    acc = jnp.zeros((C, P), jnp.float32) + b_ref[...]
    for s in range(x_ref.shape[1]):           # static unroll (S = 18)
        acc = acc + x_ref[0, s] * w_ref[s]
    o_ref[0] = _gelu(acc).astype(o_ref.dtype)


# -------------------------------- wrappers ------------------------------------

def _round_up(x, m):
    return ((x + m - 1) // m) * m


def conv1x1_gelu(x_cf, w, b, tp=1024):
    """y = GELU(W @ x + b) pointwise; x_cf: (Cin, N, H, W) -> (Cout, N, H, W)."""
    Cin, N, H, W = x_cf.shape
    Cout = w.shape[0]
    P = N * H * W
    TP = min(tp, _round_up(P, 128))
    Pp = _round_up(P, TP)
    xf = x_cf.reshape(Cin, P)
    if Pp != P:
        xf = jnp.pad(xf, ((0, 0), (0, Pp - P)))
    out = pl.pallas_call(
        _mm_bias_gelu_kernel,
        out_shape=jax.ShapeDtypeStruct((Cout, Pp), jnp.float32),
        grid=(Pp // TP,),
        in_specs=[
            pl.BlockSpec((Cin, TP), lambda i: (0, i)),
            pl.BlockSpec((Cout, Cin), lambda i: (0, 0)),
            pl.BlockSpec((Cout, 1), lambda i: (0, 0)),
        ],
        out_specs=pl.BlockSpec((Cout, TP), lambda i: (0, i)),
        compiler_params=pltpu.CompilerParams(dimension_semantics=("parallel",)),
    )(xf, w, b.reshape(Cout, 1))
    return out[:, :P].reshape(Cout, N, H, W)


def groupnorm_conv1x1_gelu(x_nchw, gamma, beta, n_groups, w, b, eps=1e-5):
    """linear_proj: GroupNorm(n_groups, C) -> Conv2d(C, E, 1) -> GELU (NCHW I/O)."""
    N, C, H, W = x_nchw.shape
    E = w.shape[0]
    HW = H * W
    G = int(n_groups)
    cg = C // G
    same_group = (jnp.arange(C)[:, None] // cg) == (jnp.arange(C)[None, :] // cg)
    agg = same_group.astype(jnp.float32) / float(cg * HW)
    out = pl.pallas_call(
        functools.partial(_gn_mm_gelu_kernel, eps=eps),
        out_shape=jax.ShapeDtypeStruct((N, E, HW), jnp.float32),
        grid=(N,),
        in_specs=[
            pl.BlockSpec((1, C, HW), lambda n: (n, 0, 0)),
            pl.BlockSpec((C, 1), lambda n: (0, 0)),
            pl.BlockSpec((C, 1), lambda n: (0, 0)),
            pl.BlockSpec((C, C), lambda n: (0, 0)),
            pl.BlockSpec((E, C), lambda n: (0, 0)),
            pl.BlockSpec((E, 1), lambda n: (0, 0)),
        ],
        out_specs=pl.BlockSpec((1, E, HW), lambda n: (n, 0, 0)),
        compiler_params=pltpu.CompilerParams(dimension_semantics=("parallel",)),
    )(x_nchw.reshape(N, C, HW).astype(jnp.float32),
      gamma.reshape(C, 1), beta.reshape(C, 1), agg, w, b.reshape(E, 1))
    return out.reshape(N, E, H, W)


def grouped_dilated_conv_gelu(x_cf, w_oihw, b, *, ksize=3, stride=2, dil=3, pad=3):
    """Conv2d(2C -> C, k=3, stride=2, dilation=3, padding=3, groups=C) + GELU.

    x_cf: (2C, N, H, W) channel-first.  Returns NCHW (N, C, Ho, Wo).
    """
    Cin, N, H, W = x_cf.shape
    C = w_oihw.shape[0]
    assert Cin == 2 * C and w_oihw.shape[1] == 2
    Ho = (H + 2 * pad - dil * (ksize - 1) - 1) // stride + 1
    Wo = (W + 2 * pad - dil * (ksize - 1) - 1) // stride + 1
    xp = jnp.pad(x_cf, ((0, 0), (0, 0), (pad, pad), (pad, pad)))
    # group co uses input channels 2co, 2co+1 -> split the channel axis as (C, 2)
    xp = xp.reshape(C, 2, N, H + 2 * pad, W + 2 * pad)
    # Pre-gather one (Ho, Wo) slab per kernel tap (strided slices, done in XLA glue).
    taps = []
    for kh in range(ksize):
        for kw in range(ksize):
            taps.append(xp[:, :, :,
                           kh * dil:kh * dil + (Ho - 1) * stride + 1:stride,
                           kw * dil:kw * dil + (Wo - 1) * stride + 1:stride])
    g = jnp.stack(taps, axis=2)                       # (C, 2, k*k, N, Ho, Wo)
    g = jnp.transpose(g, (3, 1, 2, 0, 4, 5))          # (N, 2, k*k, C, Ho, Wo)
    S = 2 * ksize * ksize
    g = g.reshape(N, S, C, Ho * Wo).astype(jnp.float32)
    # weight slab s = j*k*k + (kh*k + kw), matching g's flattening above
    wk = w_oihw.reshape(C, S).T.reshape(S, C, 1).astype(jnp.float32)
    out = pl.pallas_call(
        _grouped_dw_conv_gelu_kernel,
        out_shape=jax.ShapeDtypeStruct((N, C, Ho * Wo), jnp.float32),
        grid=(N,),
        in_specs=[
            pl.BlockSpec((1, S, C, Ho * Wo), lambda n: (n, 0, 0, 0)),
            pl.BlockSpec((S, C, 1), lambda n: (0, 0, 0)),
            pl.BlockSpec((C, 1), lambda n: (0, 0)),
        ],
        out_specs=pl.BlockSpec((1, C, Ho * Wo), lambda n: (n, 0, 0)),
        compiler_params=pltpu.CompilerParams(dimension_semantics=("parallel",)),
    )(g, wk, b.reshape(C, 1))
    return out.reshape(N, C, Ho, Wo)


# ------------------------------ glue (plain JAX) ------------------------------

def _space_to_depth_cf(x, r):
    """(C, N, H, W) -> (r*r*C, N, H/r, W/r)."""
    C, N, H, W = x.shape
    x = x.reshape(C, N, H // r, r, W // r, r)
    x = jnp.transpose(x, (3, 5, 0, 1, 2, 4))
    return x.reshape(r * r * C, N, H // r, W // r)


def _nearest_resize(mask, Hf, Wf):
    # F.interpolate default mode='nearest': idx = floor(i * H_in / H_out)
    N, H, W = mask.shape
    ri = (jnp.arange(Hf) * H) // Hf
    ci = (jnp.arange(Wf) * W) // Wf
    return mask[:, ri][:, :, ci]


def _n_groups(ch):
    return max(n - ch % n * 9999 for n in (32, 16, 8, 7, 5, 4, 3, 2, 1))


def init_params(key, embedd_dim=32):
    ks = jax.random.split(key, 16)

    def rnd(k, shape, scale=0.1):
        return scale * jax.random.normal(k, shape, jnp.float32)

    params = {}
    # synthetic backbone: 3 levels (ch 8, 16, 32 at strides 4, 8, 16); weights (Cout, Cin)
    params['stem_w'] = rnd(ks[0], (8, 48));   params['stem_b'] = rnd(ks[1], (8,))
    params['l2_w'] = rnd(ks[2], (16, 32));    params['l2_b'] = rnd(ks[3], (16,))
    params['l3_w'] = rnd(ks[4], (32, 64));    params['l3_b'] = rnd(ks[5], (32,))
    # downsampling: BN(32) -> Conv1x1(32->64) -> GELU -> Conv3x3 g=32 s=2 d=3 p=3 -> GELU
    # h_dim = (32*2 + 7)//8*8 = 64
    params['bn_gamma'] = 1.0 + rnd(ks[6], (32,))
    params['bn_beta'] = rnd(ks[7], (32,))
    params['ds_w1'] = rnd(ks[8], (64, 32));   params['ds_b1'] = rnd(ks[9], (64,))
    params['ds_w2'] = rnd(ks[10], (32, 2, 3, 3))   # PyTorch OIHW, I = Cin/groups = 2
    params['ds_b2'] = rnd(ks[11], (32,))
    # linear projections for ch_out = [8, 16, 32, 32]
    ch_out = [8, 16, 32, 32]
    kp = jax.random.split(ks[12], 4 * len(ch_out))
    params['proj'] = []
    for i, ch in enumerate(ch_out):
        params['proj'].append(dict(
            gamma=1.0 + rnd(kp[4 * i], (ch,)),
            beta=rnd(kp[4 * i + 1], (ch,)),
            w=rnd(kp[4 * i + 2], (embedd_dim, ch)),
            b=rnd(kp[4 * i + 3], (embedd_dim,)),
            groups=_n_groups(ch)))
    return params


def general_backbone_forward(x_nchw, mask, params, num_feature_levels=4):
    """Mirrors GeneralBackbone.forward: (feature_maps NCHW list, bool masks list)."""
    x_cf = jnp.transpose(x_nchw, (1, 0, 2, 3)).astype(jnp.float32)   # (C, N, H, W)

    # body (synthetic pyramid; see TODO at top of file)
    f1 = conv1x1_gelu(_space_to_depth_cf(x_cf, 4), params['stem_w'], params['stem_b'])
    f2 = conv1x1_gelu(_space_to_depth_cf(f1, 2), params['l2_w'], params['l2_b'])
    f3 = conv1x1_gelu(_space_to_depth_cf(f2, 2), params['l3_w'], params['l3_b'])

    # downsampling block: eval-mode BatchNorm folded into the 1x1 conv weights
    # (running_mean = 0, running_var = 1): W' = W * scale, b' = W @ shift + b.
    eps_bn = 1e-5
    bn_scale = params['bn_gamma'] / jnp.sqrt(1.0 + eps_bn)
    w1f = params['ds_w1'] * bn_scale[None, :]
    b1f = params['ds_w1'] @ params['bn_beta'] + params['ds_b1']
    h = conv1x1_gelu(f3, w1f, b1f)                                    # (64, N, 4, 4)
    f4 = grouped_dilated_conv_gelu(h, params['ds_w2'], params['ds_b2'])  # NCHW

    feats_nchw = [jnp.transpose(f, (1, 0, 2, 3)) for f in (f1, f2, f3)] + [f4]

    # linear_proj: GroupNorm -> Conv1x1 -> GELU
    projected = [
        groupnorm_conv1x1_gelu(f, p['gamma'], p['beta'], p['groups'], p['w'], p['b'])
        for f, p in zip(feats_nchw, params['proj'])
    ]
    feats = projected[-num_feature_levels:]

    # masks: nearest-neighbor resize, then bool
    masks = []
    for f in feats:
        Hf, Wf = f.shape[2], f.shape[3]
        masks.append(_nearest_resize(mask, Hf, Wf) != 0)
    return feats, masks


if __name__ == "__main__":
    key = jax.random.PRNGKey(0)
    kx, km, kp = jax.random.split(key, 3)
    N, H, W = 2, 64, 64
    x = jax.random.normal(kx, (N, 3, H, W), jnp.float32)
    mask = (jax.random.uniform(km, (N, H, W)) > 0.3).astype(jnp.float32)
    params = init_params(kp, embedd_dim=32)

    feats, masks = general_backbone_forward(x, mask, params, num_feature_levels=4)
    jax.block_until_ready(feats)
    jax.block_until_ready(masks)

    expected_f = [(N, 32, 16, 16), (N, 32, 8, 8), (N, 32, 4, 4), (N, 32, 2, 2)]
    expected_m = [(N, 16, 16), (N, 8, 8), (N, 4, 4), (N, 2, 2)]
    assert [tuple(f.shape) for f in feats] == expected_f, [f.shape for f in feats]
    assert [tuple(m.shape) for m in masks] == expected_m, [m.shape for m in masks]
    assert all(m.dtype == jnp.bool_ for m in masks)
    assert all(bool(jnp.all(jnp.isfinite(f))) for f in feats)
    print("KERNEL_OK")
</pallas_src>

<mosaic_0001>
module attributes {stable_mosaic.version = 11 : i64} {
  func.func @_mm_bias_gelu_kernel(%arg0: i32, %arg1: memref<48x512xf32, #tpu.memory_space<vmem>>, %arg2: memref<8x48xf32, #tpu.memory_space<vmem>>, %arg3: memref<8x1xf32, #tpu.memory_space<vmem>>, %arg4: memref<8x512xf32, #tpu.memory_space<vmem>>) attributes {dimension_semantics = [#tpu.dimension_semantics<parallel>], iteration_bounds = array<i64: 1>, scalar_prefetch = 0 : i64, scratch_operands = 0 : i64, tpu.core_type = #tpu.core_type<tc>, window_params = [{transform_indices = @transform_0, window_bounds = array<i64: 48, 512>}, {pipeline_mode = #tpu.pipeline_mode<synchronous>, transform_indices = @transform_1, window_bounds = array<i64: 8, 48>}, {pipeline_mode = #tpu.pipeline_mode<synchronous>, transform_indices = @transform_2, window_bounds = array<i64: 8, 1>}, {transform_indices = @transform_3, window_bounds = array<i64: 8, 512>}]} {
    %c0 = arith.constant 0 : index
    %c0_0 = arith.constant 0 : index
    %0 = vector.load %arg2[%c0, %c0_0] : memref<8x48xf32, #tpu.memory_space<vmem>>, vector<8x48xf32>
    %c0_1 = arith.constant 0 : index
    %c0_2 = arith.constant 0 : index
    %1 = vector.load %arg1[%c0_1, %c0_2] : memref<48x512xf32, #tpu.memory_space<vmem>>, vector<48x512xf32>
    %cst = arith.constant dense<0.000000e+00> : vector<8x512xf32>
    %2 = tpu.matmul %0, %1, %cst {dimension_numbers = #tpu.dot_dimension_numbers<[1], [0], [0], [1], [0, 0, 1, 1], [], []>} : vector<8x48xf32>, vector<48x512xf32>, vector<8x512xf32> -> vector<8x512xf32>
    %c0_3 = arith.constant 0 : index
    %c0_4 = arith.constant 0 : index
    %3 = vector.load %arg3[%c0_3, %c0_4] : memref<8x1xf32, #tpu.memory_space<vmem>>, vector<8x1xf32>
    %4 = vector.broadcast %3 : vector<8x1xf32> to vector<8x512xf32>
    %5 = arith.addf %2, %4 : vector<8x512xf32>
    %cst_5 = arith.constant 5.000000e-01 : f32
    %6 = vector.broadcast %cst_5 : f32 to vector<8x512xf32>
    %7 = arith.mulf %6, %5 : vector<8x512xf32>
    %cst_6 = arith.constant 0.707106769 : f32
    %8 = vector.broadcast %cst_6 : f32 to vector<8x512xf32>
    %9 = arith.mulf %5, %8 : vector<8x512xf32>
    %cst_7 = arith.constant 0.000000e+00 : f32
    %10 = vector.broadcast %cst_7 : f32 to vector<8x512xf32>
    %11 = arith.cmpf oge, %9, %10 : vector<8x512xf32>
    %cst_8 = arith.constant 1.000000e+00 : f32
    %cst_9 = arith.constant -1.000000e+00 : f32
    %12 = vector.broadcast %cst_8 : f32 to vector<8x512xf32>
    %13 = vector.broadcast %cst_9 : f32 to vector<8x512xf32>
    %14 = arith.select %11, %12, %13 : vector<8x512xi1>, vector<8x512xf32>
    %15 = math.absf %9 : vector<8x512xf32>
    %cst_10 = arith.constant 0.327591091 : f32
    %16 = vector.broadcast %cst_10 : f32 to vector<8x512xf32>
    %17 = arith.mulf %16, %15 : vector<8x512xf32>
    %cst_11 = arith.constant 1.000000e+00 : f32
    %18 = vector.broadcast %cst_11 : f32 to vector<8x512xf32>
    %19 = arith.addf %18, %17 : vector<8x512xf32>
    %20 = tpu.reciprocal %19 {approx = true} : vector<8x512xf32> -> vector<8x512xf32>
    %21 = arith.mulf %19, %20 : vector<8x512xf32>
    %cst_12 = arith.constant 2.000000e+00 : f32
    %22 = vector.broadcast %cst_12 : f32 to vector<8x512xf32>
    %23 = arith.subf %22, %21 : vector<8x512xf32>
    %24 = arith.mulf %20, %23 : vector<8x512xf32>
    %cst_13 = arith.constant 1.06140542 : f32
    %25 = vector.broadcast %cst_13 : f32 to vector<8x512xf32>
    %26 = arith.mulf %25, %24 : vector<8x512xf32>
    %cst_14 = arith.constant -1.45315206 : f32
    %27 = vector.broadcast %cst_14 : f32 to vector<8x512xf32>
    %28 = arith.addf %26, %27 : vector<8x512xf32>
    %29 = arith.mulf %28, %24 : vector<8x512xf32>
    %cst_15 = arith.constant 1.42141378 : f32
    %30 = vector.broadcast %cst_15 : f32 to vector<8x512xf32>
    %31 = arith.addf %29, %30 : vector<8x512xf32>
    %32 = arith.mulf %31, %24 : vector<8x512xf32>
    %cst_16 = arith.constant -0.284496725 : f32
    %33 = vector.broadcast %cst_16 : f32 to vector<8x512xf32>
    %34 = arith.addf %32, %33 : vector<8x512xf32>
    %35 = arith.mulf %34, %24 : vector<8x512xf32>
    %cst_17 = arith.constant 0.254829586 : f32
    %36 = vector.broadcast %cst_17 : f32 to vector<8x512xf32>
    %37 = arith.addf %35, %36 : vector<8x512xf32>
    %38 = arith.mulf %37, %24 : vector<8x512xf32>
    %cst_18 = arith.constant 0.000000e+00 : f32
    %39 = vector.broadcast %cst_18 : f32 to vector<8x512xf32>
    %40 = arith.subf %39, %15 : vector<8x512xf32>
    %41 = arith.mulf %40, %15 : vector<8x512xf32>
    %42 = math.exp %41 : vector<8x512xf32>
    %43 = arith.mulf %38, %42 : vector<8x512xf32>
    %cst_19 = arith.constant 1.000000e+00 : f32
    %44 = vector.broadcast %cst_19 : f32 to vector<8x512xf32>
    %45 = arith.subf %44, %43 : vector<8x512xf32>
    %46 = arith.mulf %14, %45 : vector<8x512xf32>
    %cst_20 = arith.constant 1.000000e+00 : f32
    %47 = vector.broadcast %cst_20 : f32 to vector<8x512xf32>
    %48 = arith.addf %47, %46 : vector<8x512xf32>
    %49 = arith.mulf %7, %48 : vector<8x512xf32>
    %c0_21 = arith.constant 0 : index
    %c0_22 = arith.constant 0 : index
    %50 = vector.load %arg4[%c0_21, %c0_22] : memref<8x512xf32, #tpu.memory_space<vmem>>, vector<8x512xf32>
    tpu.vector_store %arg4[%c0_21, %c0_22], %49 {strides = array<i32>} : memref<8x512xf32, #tpu.memory_space<vmem>>, vector<8x512xf32>,
    return
  }
  func.func @transform_0(%arg0: i32) -> (i32, i32) {
    %c0_i32 = arith.constant 0 : i32
    %c0_i32_0 = arith.constant 0 : i32
    return %c0_i32, %arg0 : i32, i32
  }
  func.func @transform_1(%arg0: i32) -> (i32, i32) {
    %c0_i32 = arith.constant 0 : i32
    %c0_i32_0 = arith.constant 0 : i32
    %c0_i32_1 = arith.constant 0 : i32
    return %c0_i32, %c0_i32_0 : i32, i32
  }
  func.func @transform_2(%arg0: i32) -> (i32, i32) {
    %c0_i32 = arith.constant 0 : i32
    %c0_i32_0 = arith.constant 0 : i32
    %c0_i32_1 = arith.constant 0 : i32
    return %c0_i32, %c0_i32_0 : i32, i32
  }
  func.func @transform_3(%arg0: i32) -> (i32, i32) {
    %c0_i32 = arith.constant 0 : i32
    %c0_i32_0 = arith.constant 0 : i32
    return %c0_i32, %arg0 : i32, i32
  }
}

</mosaic_0001>

<bundles_post_ra>
// kernel: tpu_custom_call.1
= control target key start
LH: loop header
LB: loop body
LE: loop exit
PB: predicated region body
PF: predicated region fallthrough
CT: control target
= control target key end

     0   :  { %8 = vsyncpa [#allocation3], 0  ;;  %s432_s0 = inlined_call_operand.hbm [shape: f32[48,512], index: 0, kind: input, shape index: {}]   ;;  %s433_s1 = inlined_call_operand.vmem [shape: f32[8,48], index: 1, kind: input, shape index: {}]   ;;  %s434_s2 = inlined_call_operand.vmem [shape: f32[8,1], index: 2, kind: input, shape index: {}]   ;;  %s435_s3 = inlined_call_operand.hbm [shape: f32[8,512], index: 3, kind: output, shape index: {}]  }
   0x1   :  { %9 = vsyncpa [#allocation4], 0  ;;  %s14_s14 = sshll.u32 %s432_s0, 4  ;;  %s362_s15 = smov [#allocation2]   ;;  %s15_s14 = int_to_ptr.hbm [resolvable:$true] %s14_s14 }
   0x2   :  { %s16_s16 = sshll.u32 %s362_s15, 4  ;;  %s363_s17 = smov 512   ;;  %s17_s16 = int_to_ptr.vmem [resolvable:$true] %s16_s16 }
   0x3   :  { %s364_s18 = smov 32  }
   0x4   :  { %22 = dma.hbm_to_vmem [thread:$0]  %s15_s14, 3072, %s17_s16, [#allocation3], %s363_s17, %s363_s17, %s364_s18  }
   0x5   :  { %358 = dma.done.wait [#allocation3], 3072  }
   0x6   :  { %359 = vsyncadd [#allocation3], 4294964224  ;;  %v365_v0 = vmov 0   ;;  %v52_v1 = vld [vmem:[#allocation2 + $0xa0] sm:$0xff]  ;;  %v53_v2 = vld [vmem:[#allocation2 + $0xa8] sm:$0xff]  ;;  %vm62_vm0 = vcmask 392192  }
   0x7   :  { %293 = vset.pattern.permute.xlu0 %v365_v0  ;;  %v54_v3 = vld [vmem:[#allocation2 + $0xb0] sm:$0xff]  ;;  %76 = vmatpush.msra.mxu0 %v52_v1  ;;  %v55_v4 = vld [vmem:[#allocation2 + $0xb8] sm:$0xff]  ;;  %v48_v5 = vld [vmem:[#allocation2 + $0x80] sm:$0xff]  ;;  %s273_s24 = sshll.u32 %s435_s3, 4  ;;  %s274_s24 = int_to_ptr.hbm [resolvable:$true] %s273_s24 }
   0x8   :  { %96 = vmatpush.msra.mxu1 %v53_v2  ;;  %v49_v6 = vld [vmem:[#allocation2 + $0x88] sm:$0xff]  ;;  %116 = vmatpush.msra.mxu2 %v54_v3  ;;  %v50_v7 = vld [vmem:[#allocation2 + $0x90] sm:$0xff]  ;;  %v51_v8 = vld [vmem:[#allocation2 + $0x98] sm:$0xff] }
   0x9   :  { %136 = vmatpush.msra.mxu3 %v55_v4  ;;  %v44_v9 = vld [vmem:[#allocation2 + $0x60] sm:$0xff]  ;;  %77 = vmatpush.msra.mxu0 %v48_v5  ;;  %v45_v10 = vld [vmem:[#allocation2 + $0x68] sm:$0xff]  ;;  %v46_v11 = vld [vmem:[#allocation2 + $0x70] sm:$0xff] }
   0xa   :  { %97 = vmatpush.msra.mxu1 %v49_v6  ;;  %v47_v12 = vld [vmem:[#allocation2 + $0x78] sm:$0xff]  ;;  %117 = vmatpush.msra.mxu2 %v50_v7  ;;  %v40_v13 = vld [vmem:[#allocation2 + $0x40] sm:$0xff]  ;;  %v41_v14 = vld [vmem:[#allocation2 + $0x48] sm:$0xff] }
   0xb   :  { %137 = vmatpush.msra.mxu3 %v51_v8  ;;  %78 = vmatpush.msra.mxu0 %v44_v9  ;;  %v42_v15 = vld [vmem:[#allocation2 + $0x50] sm:$0xff]  ;;  %v43_v16 = vld [vmem:[#allocation2 + $0x58] sm:$0xff]  ;;  %v36_v17 = vld [vmem:[#allocation2 + $0x20] sm:$0xff] }
   0xc   :  { %98 = vmatpush.msra.mxu1 %v45_v10  ;;  %118 = vmatpush.msra.mxu2 %v46_v11  ;;  %v37_v18 = vld [vmem:[#allocation2 + $0x28] sm:$0xff]  ;;  %v38_v19 = vld [vmem:[#allocation2 + $0x30] sm:$0xff]  ;;  %v39_v20 = vld [vmem:[#allocation2 + $0x38] sm:$0xff] }
   0xd   :  { %138 = vmatpush.msra.mxu3 %v47_v12  ;;  %79 = vmatpush.msra.mxu0 %v40_v13  ;;  %v32_v21 = vld [vmem:[#allocation2] sm:$0xff]  ;;  %v33_v22 = vld [vmem:[#allocation2 + $0x8] sm:$0xff]  ;;  %v34_v23 = vld [vmem:[#allocation2 + $0x10] sm:$0xff] }
   0xe   :  { %99 = vmatpush.msra.mxu1 %v41_v14  ;;  %119 = vmatpush.msra.mxu2 %v42_v15  ;;  %v35_v24 = vld [vmem:[#allocation2 + $0x18] sm:$0xff]  ;;  %v31_v25 = vld [vmem:[%s433_s1] sm:$0xff]  ;;  %s367_s1 = smov [#allocation5]  }
   0xf   :  { %139 = vmatpush.msra.mxu3 %v43_v16  ;;  %80 = vmatpush.msra.mxu0 %v36_v17  ;;  %v56_v26 = vld [vmem:[%s434_s2] sm:$0xff]  ;;  %s271_s2 = sshll.u32 %s367_s1, 4  ;;  %s272_s2 = int_to_ptr.vmem [resolvable:$true] %s271_s2 }
  0x10   :  { %100 = vmatpush.msra.mxu1 %v37_v18  ;;  %120 = vmatpush.msra.mxu2 %v38_v19 }
  0x11   :  { %140 = vmatpush.msra.mxu3 %v39_v20  ;;  %81 = vmatpush.msra.mxu0 %v32_v21 }
  0x12   :  { %101 = vmatpush.msra.mxu1 %v33_v22  ;;  %121 = vmatpush.msra.mxu2 %v34_v23 }
  0x13   :  { %141 = vmatpush.msra.mxu3 %v35_v24  ;;  %283 = vmatmul.msk.f32.vlgmr.msra.gmra.mxu0 %vm62_vm0, %v31_v25 }
  0x14   :  { %284 = vmatmul.msk.f32.vlgmr.msra.gmra.mxu1 %vm62_vm0, %v31_v25  ;;  %285 = vmatmul.msk.f32.vlgmr.msra.gmra.mxu2 %vm62_vm0, %v31_v25 }
  0x15   :  { %286 = vmatmul.msk.f32.vlgmr.msra.gmra.mxu3 %vm62_vm0, %v31_v25  ;;  %59 = vperm.xlu0 %293, %v56_v26  }
  0x87   :  { %v60_v27 = vpop.permute.xlu0 %59 }
  0x90   :  { %v83_v28 = vpop.f32.mrf.mxu0 }
  0x91   :  { %v103_v29 = vpop.f32.mrf.mxu1  ;;  %v397_v30 = vadd.f32 %v83_v28, %v60_v27 }
  0x92   :  { %v399_v31 = vadd.f32 %v103_v29, %v60_v27 }
  0x93   :  { %v402_v32 = vmul.f32 0.70710677, %v397_v30 }
  0x94   :  { %v405_v33 = vmul.f32 0.70710677, %v399_v31 }
  0x95   :  { %v162_v34 = vand.u32 2147483647, %v402_v32  ;;  %vm154_vm1 = vcmp.ge.f32.partialorder %v402_v32, 0.0 }
  0x96   :  { %v163_v35 = vand.u32 2147483647, %v405_v33  ;;  %vm155_vm2 = vcmp.ge.f32.partialorder %v405_v33, 0.0 }
  0x97   :  { %v166_v36 = vmul.f32 0.3275911, %v162_v34  ;;  %v123_v38 = vpop.f32.mrf.mxu2  ;;  %v226_v59 = vsub.f32 0.0, %v162_v34 }
  0x98   :  { %v167_v37 = vmul.f32 0.3275911, %v163_v35  ;;  %v143_v39 = vpop.f32.mrf.mxu3  ;;  %v409_v40 = vadd.f32 %v123_v38, %v60_v27  ;;  %v227_v63 = vsub.f32 0.0, %v163_v35 }
  0x99   :  { %v411_v41 = vadd.f32 %v143_v39, %v60_v27  ;;  %v170_v42 = vadd.f32 1.0, %v166_v36  ;;  %v230_v4 = vmul.f32 %v226_v59, %v162_v34 }
  0x9a   :  { %v171_v43 = vadd.f32 1.0, %v167_v37  ;;  %v414_v44 = vmul.f32 0.70710677, %v409_v40  ;;  %v231_v9 = vmul.f32 %v227_v63, %v163_v35  ;;  %v366_v63 = vmov -1.0  }
  0x9b   :  { %v417_v45 = vmul.f32 0.70710677, %v411_v41  ;;  %294 = vrcp.f32 %v170_v42  ;;  %v234_v14 = vmul.f32 1.442695, %v230_v4 }
  0x9c   :  { %296 = vrcp.f32 %v171_v43  ;;  %v164_v46 = vand.u32 2147483647, %v414_v44  ;;  %v236_v21 = vmul.f32 1.442695, %v231_v9  ;;  %v147_v9 = vmul.f32 0.5, %v399_v31 }
  0x9d   :  { %v165_v47 = vand.u32 2147483647, %v417_v45  ;;  %vm156_vm3 = vcmp.ge.f32.partialorder %v414_v44, 0.0  ;;  %vm157_vm4 = vcmp.ge.f32.partialorder %v417_v45, 0.0  ;;  %v149_v44 = vmul.f32 0.5, %v411_v41 }
  0x9e   :  { %v168_v48 = vmul.f32 0.3275911, %v164_v46  ;;  %v228_v15 = vsub.f32 0.0, %v164_v46 }
  0x9f   :  { %v169_v49 = vmul.f32 0.3275911, %v165_v47  ;;  %v229_v19 = vsub.f32 0.0, %v165_v47 }
  0xa0   :  { %v172_v50 = vadd.f32 1.0, %v168_v48  ;;  %v232_v26 = vmul.f32 %v228_v15, %v164_v46 }
  0xa1   :  { %v295_v51 = vpop.eup %294  ;;  %v173_v52 = vadd.f32 1.0, %v169_v49  ;;  %v233_v34 = vmul.f32 %v229_v19, %v165_v47  ;;  %v161_v19 = vsel %vm157_vm4, 1.0, %v366_v63 }
  0xa2   :  { %v297_v53 = vpop.eup %296  ;;  %v178_v54 = vmul.f32 %v295_v51, %v170_v42  ;;  %298 = vrcp.f32 %v172_v50  ;;  %v238_v42 = vmul.f32 1.442695, %v232_v26 }
  0xa3   :  { %v179_v55 = vmul.f32 %v297_v53, %v171_v43  ;;  %300 = vrcp.f32 %v173_v52 }
  0xa4   :  { %v182_v56 = vsub.f32 2.0, %v178_v54  ;;  %302 = vpow2.f32 %v234_v14 }
  0xa5   :  { %v183_v57 = vsub.f32 2.0, %v179_v55  ;;  %304 = vpow2.f32 %v236_v21 }
  0xa6   :  { %v186_v58 = vmul.f32 %v295_v51, %v182_v56  ;;  %306 = vpow2.f32 %v238_v42 }
  0xa7   :  { %v187_v60 = vmul.f32 %v297_v53, %v183_v57 }
  0xa8   :  { %v299_v61 = vpop.eup %298  ;;  %v190_v62 = vmul.f32 1.0614054, %v186_v58 }
  0xa9   :  { %v301_v0 = vpop.eup %300  ;;  %v191_v1 = vmul.f32 1.0614054, %v187_v60  ;;  %v180_v2 = vmul.f32 %v299_v61, %v172_v50  ;;  %v240_v50 = vmul.f32 1.442695, %v233_v34 }
  0xaa   :  { %v194_v3 = vadd.f32 -1.4531521, %v190_v62  ;;  %v181_v5 = vmul.f32 %v301_v0, %v173_v52  ;;  %v303_v53 = vpop.eup %302 }
  0xab   :  { %v195_v6 = vadd.f32 -1.4531521, %v191_v1  ;;  %v184_v7 = vsub.f32 2.0, %v180_v2  ;;  %v305_v55 = vpop.eup %304  ;;  %308 = vpow2.f32 %v240_v50 }
  0xac   :  { %v198_v8 = vmul.f32 %v194_v3, %v186_v58  ;;  %v185_v10 = vsub.f32 2.0, %v181_v5  ;;  %v307_v32 = vpop.eup %306 }
  0xad   :  { %v199_v11 = vmul.f32 %v195_v6, %v187_v60  ;;  %v188_v12 = vmul.f32 %v299_v61, %v184_v7  ;;  %v146_v6 = vmul.f32 0.5, %v397_v30 }
  0xae   :  { %v202_v13 = vadd.f32 1.4214138, %v198_v8  ;;  %v189_v16 = vmul.f32 %v301_v0, %v185_v10  ;;  %v158_v0 = vsel %vm154_vm1, 1.0, %v366_v63 }
  0xaf   :  { %v203_v17 = vadd.f32 1.4214138, %v199_v11  ;;  %v192_v18 = vmul.f32 1.0614054, %v188_v12 }
  0xb0   :  { %v206_v20 = vmul.f32 %v202_v13, %v186_v58  ;;  %v193_v22 = vmul.f32 1.0614054, %v189_v16 }
  0xb1   :  { %v207_v23 = vmul.f32 %v203_v17, %v187_v60  ;;  %v196_v24 = vadd.f32 -1.4531521, %v192_v18  ;;  %v309_v33 = vpop.eup %308 }
  0xb2   :  { %v210_v25 = vadd.f32 -0.28449672, %v206_v20  ;;  %v197_v27 = vadd.f32 -1.4531521, %v193_v22  ;;  %v148_v20 = vmul.f32 0.5, %v409_v40 }
  0xb3   :  { %v211_v28 = vadd.f32 -0.28449672, %v207_v23  ;;  %v200_v29 = vmul.f32 %v196_v24, %v188_v12 }
  0xb4   :  { %v214_v35 = vmul.f32 %v210_v25, %v186_v58  ;;  %v201_v36 = vmul.f32 %v197_v27, %v189_v16 }
  0xb5   :  { %v215_v37 = vmul.f32 %v211_v28, %v187_v60  ;;  %v204_v38 = vadd.f32 1.4214138, %v200_v29 }
  0xb6   :  { %v218_v39 = vadd.f32 0.2548296, %v214_v35  ;;  %v205_v43 = vadd.f32 1.4214138, %v201_v36 }
  0xb7   :  { %v219_v48 = vadd.f32 0.2548296, %v215_v37  ;;  %v208_v49 = vmul.f32 %v204_v38, %v188_v12 }
  0xb8   :  { %v222_v51 = vmul.f32 %v218_v39, %v186_v58  ;;  %v209_v52 = vmul.f32 %v205_v43, %v189_v16 }
  0xb9   :  { %v223_v46 = vmul.f32 %v219_v48, %v187_v60  ;;  %v212_v54 = vadd.f32 -0.28449672, %v208_v49  ;;  %v159_v60 = vsel %vm155_vm2, 1.0, %v366_v63 }
  0xba   :  { %v242_v47 = vmul.f32 %v303_v53, %v222_v51  ;;  %v213_v56 = vadd.f32 -0.28449672, %v209_v52 }
  0xbb   :  { %v243_v57 = vmul.f32 %v305_v55, %v223_v46  ;;  %v216_v59 = vmul.f32 %v212_v54, %v188_v12 }
  0xbc   :  { %v246_v61 = vsub.f32 1.0, %v242_v47  ;;  %v217_v62 = vmul.f32 %v213_v56, %v189_v16 }
  0xbd   :  { %v247_v58 = vsub.f32 1.0, %v243_v57  ;;  %v220_v1 = vadd.f32 0.2548296, %v216_v59 }
  0xbe   :  { %v250_v2 = vmul.f32 %v246_v61, %v158_v0  ;;  %v221_v3 = vadd.f32 0.2548296, %v217_v62 }
  0xbf   :  { %v251_v4 = vmul.f32 %v247_v58, %v159_v60  ;;  %v224_v5 = vmul.f32 %v220_v1, %v188_v12  ;;  %v160_v12 = vsel %vm156_vm3, 1.0, %v366_v63 }
  0xc0   :  { %v254_v7 = vadd.f32 1.0, %v250_v2  ;;  %v225_v8 = vmul.f32 %v221_v3, %v189_v16 }
  0xc1   :  { %v255_v10 = vadd.f32 1.0, %v251_v4  ;;  %v244_v11 = vmul.f32 %v307_v32, %v224_v5 }
  0xc2   :  { %v258_v13 = vmul.f32 %v254_v7, %v146_v6  ;;  %v245_v14 = vmul.f32 %v309_v33, %v225_v8 }
  0xc3   :  { %v259_v15 = vmul.f32 %v255_v10, %v147_v9  ;;  %v248_v17 = vsub.f32 1.0, %v244_v11 }
  0xc4   :  { %262 = vst [vmem:[#allocation5] sm:$0xff] %v258_v13  ;;  %v249_v18 = vsub.f32 1.0, %v245_v14 }
  0xc5   :  { %263 = vst [vmem:[#allocation5 + $0x8] sm:$0xff] %v259_v15  ;;  %v252_v30 = vmul.f32 %v248_v17, %v160_v12 }
  0xc6   :  { %v253_v16 = vmul.f32 %v249_v18, %v161_v19 }
  0xc7   :  { %v256_v31 = vadd.f32 1.0, %v252_v30 }
  0xc8   :  { %v257_v45 = vadd.f32 1.0, %v253_v16 }
  0xc9   :  { %v260_v21 = vmul.f32 %v256_v31, %v148_v20 }
  0xca   :  { %v261_v22 = vmul.f32 %v257_v45, %v149_v44 }
  0xcb   :  { %264 = vst [vmem:[#allocation5 + $0x10] sm:$0xff] %v260_v21 }
  0xcc   :  { %265 = vst [vmem:[#allocation5 + $0x18] sm:$0xff] %v261_v22 }
  0xcd   :  { %276 = dma.vmem_to_hbm [thread:$0]  %s272_s2, 512, %s274_s24, [#allocation4]  }
  0xce   :  { %360 = dma.done.wait [#allocation4], 512  }
  0xcf   :  { %361 = vsyncadd [#allocation4], 4294966784 }
  0xd0   :  { %281 = vsyncpa [#allocation3], 1 }
  0xd1   :  { %282 = vsyncpa [#allocation4], 1 }

</bundles_post_ra>
